<compile_context>
chip_gen: v7x
topology: tpu7x:2x2x1
jax: 0.10.0
libtpu: 0.0.40
codegen_flags: <defaults>
</compile_context>

<pallas_src>
import functools

import jax
import jax.numpy as jnp
from jax.experimental import pallas as pl
from jax.experimental.pallas import tpu as pltpu


def _rnn_kernel(x_ref, wxh_ref, whh_ref, bh_ref, wxo_ref, who_ref, bo_ref,
                out_ref, h_hist_ref):
    seq_len = x_ref.shape[0]
    hid_p = whh_ref.shape[0]

    x = x_ref[...]                                     # (T, inp)
    whh = whh_ref[...]                                 # (hid_p, hid_p)

    # ---- preamble: batched input->hidden projection (one MXU GEMM) -----------
    xh_pre = (jnp.dot(x, wxh_ref[...], preferred_element_type=jnp.float32)
              + bh_ref[...])                           # (T, hid_p)

    # ---- serial recurrence: only h @ Whh (+ add) sits on the critical path ---
    # Hidden state carried in vregs; loop fully unrolled (static small seq_len)
    # so the scheduler can overlap the history stores / row slices with the
    # dependent matmul chain.
    h = jnp.zeros((1, hid_p), dtype=jnp.float32)
    for t in range(seq_len):
        h_hist_ref[pl.ds(t, 1), :] = h                 # stash PRE-update hidden h_t
        h = xh_pre[t:t + 1, :] + jnp.dot(h, whh, preferred_element_type=jnp.float32)

    # ---- epilogue: batched output projection + tanh, single dense store ------
    h_prev = h_hist_ref[...]                           # (T, hid_p) = [h_0 .. h_{T-1}]
    out_pre = (jnp.dot(x, wxo_ref[...], preferred_element_type=jnp.float32)
               + jnp.dot(h_prev, who_ref[...], preferred_element_type=jnp.float32)
               + bo_ref[...])                          # (T, out_p)
    out_ref[...] = jnp.tanh(out_pre).astype(out_ref.dtype)


def _round_up(n, m):
    return ((n + m - 1) // m) * m


@functools.partial(jax.jit, static_argnums=(5, 6, 7))
def custom_rnn_for_context(x, w_i2h, b_i2h, w_i2o, b_i2o, inp_dim, hid_dim, out_dim):
    """x: (seq_len, inp_dim). Weights in PyTorch nn.Linear layout:
       w_i2h: (hid_dim, inp_dim+hid_dim), b_i2h: (hid_dim,)
       w_i2o: (out_dim, inp_dim+hid_dim), b_i2o: (out_dim,)
       Returns (seq_len, 1, out_dim) — stacked per-step tanh outputs."""
    seq_len = x.shape[0]
    x = x.astype(jnp.float32)

    # Weight prep (fused/cached under jit).  Split the concat-Linear:
    #   y = [x, h] @ W.T + b = x @ Wx.T + h @ Wh.T + b
    wxh = jnp.transpose(w_i2h[:, :inp_dim]).astype(jnp.float32)   # (inp, hid)
    whh = jnp.transpose(w_i2h[:, inp_dim:]).astype(jnp.float32)   # (hid, hid)
    wxo = jnp.transpose(w_i2o[:, :inp_dim]).astype(jnp.float32)   # (inp, out)
    who = jnp.transpose(w_i2o[:, inp_dim:]).astype(jnp.float32)   # (hid, out)
    bh = b_i2h.reshape(1, hid_dim).astype(jnp.float32)
    bo = b_i2o.reshape(1, out_dim).astype(jnp.float32)

    # Pad hidden and output lane dims to multiples of 128 so every in-kernel
    # matmul, history store, and the final output store are lane-dense.
    # Padded weight columns/rows and bias entries are zero => padded hidden
    # entries stay exactly 0 and contribute nothing; padded output columns are
    # tanh(0)=0 and are sliced away below.
    hid_p = _round_up(hid_dim, 128)
    out_p = _round_up(out_dim, 128)
    hpad = hid_p - hid_dim
    opad = out_p - out_dim
    if hpad:
        wxh = jnp.pad(wxh, ((0, 0), (0, hpad)))
        whh = jnp.pad(whh, ((0, hpad), (0, hpad)))
        who = jnp.pad(who, ((0, hpad), (0, 0)))
        bh = jnp.pad(bh, ((0, 0), (0, hpad)))
    if opad:
        wxo = jnp.pad(wxo, ((0, 0), (0, opad)))
        who = jnp.pad(who, ((0, 0), (0, opad)))
        bo = jnp.pad(bo, ((0, 0), (0, opad)))

    out = pl.pallas_call(
        _rnn_kernel,
        out_shape=jax.ShapeDtypeStruct((seq_len, out_p), jnp.float32),
        in_specs=[pl.BlockSpec(memory_space=pltpu.MemorySpace.VMEM)] * 7,
        out_specs=pl.BlockSpec(memory_space=pltpu.MemorySpace.VMEM),
        scratch_shapes=[pltpu.VMEM((seq_len, hid_p), jnp.float32)],  # h_t history
    )(x, wxh, whh, bh, wxo, who, bo)

    # Match the PyTorch return: list of (1, out_dim) tensors -> (seq, 1, out_dim)
    return out[:, :out_dim].reshape(seq_len, 1, out_dim)


def _reference(x, w_i2h, b_i2h, w_i2o, b_i2o, hid_dim):
    """Pure-JAX reference mirroring the PyTorch loop exactly."""
    hidden = jnp.zeros((1, hid_dim), jnp.float32)
    outs = []
    for t in range(x.shape[0]):
        vec = x[t:t + 1]                                  # (1, inp_dim)
        combined = jnp.concatenate([vec, hidden], axis=1)
        hidden = combined @ w_i2h.T + b_i2h
        outs.append(jnp.tanh(combined @ w_i2o.T + b_i2o))
    return jnp.stack(outs, axis=0)                        # (seq, 1, out_dim)


if __name__ == "__main__":
    seq_len, inp_dim, hid_dim, out_dim = 8, 16, 32, 32

    key = jax.random.PRNGKey(0)
    k_x, k_wh, k_bh, k_wo, k_bo = jax.random.split(key, 5)

    # Deterministic "PyTorch-like" init: U(-1/sqrt(fan_in), 1/sqrt(fan_in))
    fan_in = inp_dim + hid_dim
    bound = 1.0 / jnp.sqrt(float(fan_in))
    x = jax.random.normal(k_x, (seq_len, inp_dim), jnp.float32)
    w_i2h = jax.random.uniform(k_wh, (hid_dim, fan_in), jnp.float32, -bound, bound)
    b_i2h = jax.random.uniform(k_bh, (hid_dim,), jnp.float32, -bound, bound)
    w_i2o = jax.random.uniform(k_wo, (out_dim, fan_in), jnp.float32, -bound, bound)
    b_i2o = jax.random.uniform(k_bo, (out_dim,), jnp.float32, -bound, bound)

    out = custom_rnn_for_context(x, w_i2h, b_i2h, w_i2o, b_i2o,
                                 inp_dim, hid_dim, out_dim)
    out = jax.block_until_ready(out)

    ref = _reference(x, w_i2h, b_i2h, w_i2o, b_i2o, hid_dim)
    assert out.shape == (seq_len, 1, out_dim)
    assert jnp.allclose(out, ref, atol=1e-5, rtol=1e-5), "mismatch vs reference"

    print("KERNEL_OK")
</pallas_src>

<mosaic_0001>
module attributes {stable_mosaic.version = 11 : i64} {
  func.func @_rnn_kernel(%arg0: memref<8x16xf32, #tpu.memory_space<vmem>>, %arg1: memref<16x128xf32, #tpu.memory_space<vmem>>, %arg2: memref<128x128xf32, #tpu.memory_space<vmem>>, %arg3: memref<1x128xf32, #tpu.memory_space<vmem>>, %arg4: memref<16x128xf32, #tpu.memory_space<vmem>>, %arg5: memref<128x128xf32, #tpu.memory_space<vmem>>, %arg6: memref<1x128xf32, #tpu.memory_space<vmem>>, %arg7: memref<8x128xf32, #tpu.memory_space<vmem>>, %arg8: memref<8x128xf32, #tpu.memory_space<vmem>>) attributes {dimension_semantics = [], scalar_prefetch = 0 : i64, scratch_operands = 1 : i64, tpu.core_type = #tpu.core_type<tc>} {
    %c0 = arith.constant 0 : index
    %c0_0 = arith.constant 0 : index
    %0 = vector.load %arg0[%c0, %c0_0] : memref<8x16xf32, #tpu.memory_space<vmem>>, vector<8x16xf32>
    %c0_1 = arith.constant 0 : index
    %c0_2 = arith.constant 0 : index
    %1 = vector.load %arg2[%c0_1, %c0_2] : memref<128x128xf32, #tpu.memory_space<vmem>>, vector<128x128xf32>
    %c0_3 = arith.constant 0 : index
    %c0_4 = arith.constant 0 : index
    %2 = vector.load %arg1[%c0_3, %c0_4] : memref<16x128xf32, #tpu.memory_space<vmem>>, vector<16x128xf32>
    %cst = arith.constant dense<0.000000e+00> : vector<8x128xf32>
    %3 = tpu.matmul %0, %2, %cst {dimension_numbers = #tpu.dot_dimension_numbers<[1], [0], [0], [1], [0, 0, 1, 1], [], []>} : vector<8x16xf32>, vector<16x128xf32>, vector<8x128xf32> -> vector<8x128xf32>
    %c0_5 = arith.constant 0 : index
    %c0_6 = arith.constant 0 : index
    %4 = vector.load %arg3[%c0_5, %c0_6] : memref<1x128xf32, #tpu.memory_space<vmem>>, vector<1x128xf32>
    %5 = vector.broadcast %4 : vector<1x128xf32> to vector<8x128xf32>
    %6 = arith.addf %3, %5 : vector<8x128xf32>
    %cst_7 = arith.constant 0.000000e+00 : f32
    %7 = vector.broadcast %cst_7 : f32 to vector<1x128xf32>
    %c0_8 = arith.constant 0 : index
    %c0_9 = arith.constant 0 : index
    %8 = vector.load %arg8[%c0_8, %c0_9] : memref<8x128xf32, #tpu.memory_space<vmem>>, vector<1x128xf32>
    tpu.vector_store %arg8[%c0_8, %c0_9], %7 {strides = array<i32>} : memref<8x128xf32, #tpu.memory_space<vmem>>, vector<1x128xf32>,
    %9 = vector.extract_strided_slice %6 {offsets = [0, 0], sizes = [1, 128], strides = [1, 1]} : vector<8x128xf32> to vector<1x128xf32>
    %cst_10 = arith.constant dense<0.000000e+00> : vector<1x128xf32>
    %10 = tpu.matmul %7, %1, %cst_10 {dimension_numbers = #tpu.dot_dimension_numbers<[1], [0], [0], [1], [0, 0, 1, 1], [], []>} : vector<1x128xf32>, vector<128x128xf32>, vector<1x128xf32> -> vector<1x128xf32>
    %11 = arith.addf %9, %10 : vector<1x128xf32>
    %c1 = arith.constant 1 : index
    %c0_11 = arith.constant 0 : index
    %12 = vector.load %arg8[%c1, %c0_11] : memref<8x128xf32, #tpu.memory_space<vmem>>, vector<1x128xf32>
    tpu.vector_store %arg8[%c1, %c0_11], %11 {strides = array<i32>} : memref<8x128xf32, #tpu.memory_space<vmem>>, vector<1x128xf32>,
    %13 = vector.extract_strided_slice %6 {offsets = [1, 0], sizes = [1, 128], strides = [1, 1]} : vector<8x128xf32> to vector<1x128xf32>
    %cst_12 = arith.constant dense<0.000000e+00> : vector<1x128xf32>
    %14 = tpu.matmul %11, %1, %cst_12 {dimension_numbers = #tpu.dot_dimension_numbers<[1], [0], [0], [1], [0, 0, 1, 1], [], []>} : vector<1x128xf32>, vector<128x128xf32>, vector<1x128xf32> -> vector<1x128xf32>
    %15 = arith.addf %13, %14 : vector<1x128xf32>
    %c2 = arith.constant 2 : index
    %c0_13 = arith.constant 0 : index
    %16 = vector.load %arg8[%c2, %c0_13] : memref<8x128xf32, #tpu.memory_space<vmem>>, vector<1x128xf32>
    tpu.vector_store %arg8[%c2, %c0_13], %15 {strides = array<i32>} : memref<8x128xf32, #tpu.memory_space<vmem>>, vector<1x128xf32>,
    %17 = vector.extract_strided_slice %6 {offsets = [2, 0], sizes = [1, 128], strides = [1, 1]} : vector<8x128xf32> to vector<1x128xf32>
    %cst_14 = arith.constant dense<0.000000e+00> : vector<1x128xf32>
    %18 = tpu.matmul %15, %1, %cst_14 {dimension_numbers = #tpu.dot_dimension_numbers<[1], [0], [0], [1], [0, 0, 1, 1], [], []>} : vector<1x128xf32>, vector<128x128xf32>, vector<1x128xf32> -> vector<1x128xf32>
    %19 = arith.addf %17, %18 : vector<1x128xf32>
    %c3 = arith.constant 3 : index
    %c0_15 = arith.constant 0 : index
    %20 = vector.load %arg8[%c3, %c0_15] : memref<8x128xf32, #tpu.memory_space<vmem>>, vector<1x128xf32>
    tpu.vector_store %arg8[%c3, %c0_15], %19 {strides = array<i32>} : memref<8x128xf32, #tpu.memory_space<vmem>>, vector<1x128xf32>,
    %21 = vector.extract_strided_slice %6 {offsets = [3, 0], sizes = [1, 128], strides = [1, 1]} : vector<8x128xf32> to vector<1x128xf32>
    %cst_16 = arith.constant dense<0.000000e+00> : vector<1x128xf32>
    %22 = tpu.matmul %19, %1, %cst_16 {dimension_numbers = #tpu.dot_dimension_numbers<[1], [0], [0], [1], [0, 0, 1, 1], [], []>} : vector<1x128xf32>, vector<128x128xf32>, vector<1x128xf32> -> vector<1x128xf32>
    %23 = arith.addf %21, %22 : vector<1x128xf32>
    %c4 = arith.constant 4 : index
    %c0_17 = arith.constant 0 : index
    %24 = vector.load %arg8[%c4, %c0_17] : memref<8x128xf32, #tpu.memory_space<vmem>>, vector<1x128xf32>
    tpu.vector_store %arg8[%c4, %c0_17], %23 {strides = array<i32>} : memref<8x128xf32, #tpu.memory_space<vmem>>, vector<1x128xf32>,
    %25 = vector.extract_strided_slice %6 {offsets = [4, 0], sizes = [1, 128], strides = [1, 1]} : vector<8x128xf32> to vector<1x128xf32>
    %cst_18 = arith.constant dense<0.000000e+00> : vector<1x128xf32>
    %26 = tpu.matmul %23, %1, %cst_18 {dimension_numbers = #tpu.dot_dimension_numbers<[1], [0], [0], [1], [0, 0, 1, 1], [], []>} : vector<1x128xf32>, vector<128x128xf32>, vector<1x128xf32> -> vector<1x128xf32>
    %27 = arith.addf %25, %26 : vector<1x128xf32>
    %c5 = arith.constant 5 : index
    %c0_19 = arith.constant 0 : index
    %28 = vector.load %arg8[%c5, %c0_19] : memref<8x128xf32, #tpu.memory_space<vmem>>, vector<1x128xf32>
    tpu.vector_store %arg8[%c5, %c0_19], %27 {strides = array<i32>} : memref<8x128xf32, #tpu.memory_space<vmem>>, vector<1x128xf32>,
    %29 = vector.extract_strided_slice %6 {offsets = [5, 0], sizes = [1, 128], strides = [1, 1]} : vector<8x128xf32> to vector<1x128xf32>
    %cst_20 = arith.constant dense<0.000000e+00> : vector<1x128xf32>
    %30 = tpu.matmul %27, %1, %cst_20 {dimension_numbers = #tpu.dot_dimension_numbers<[1], [0], [0], [1], [0, 0, 1, 1], [], []>} : vector<1x128xf32>, vector<128x128xf32>, vector<1x128xf32> -> vector<1x128xf32>
    %31 = arith.addf %29, %30 : vector<1x128xf32>
    %c6 = arith.constant 6 : index
    %c0_21 = arith.constant 0 : index
    %32 = vector.load %arg8[%c6, %c0_21] : memref<8x128xf32, #tpu.memory_space<vmem>>, vector<1x128xf32>
    tpu.vector_store %arg8[%c6, %c0_21], %31 {strides = array<i32>} : memref<8x128xf32, #tpu.memory_space<vmem>>, vector<1x128xf32>,
    %33 = vector.extract_strided_slice %6 {offsets = [6, 0], sizes = [1, 128], strides = [1, 1]} : vector<8x128xf32> to vector<1x128xf32>
    %cst_22 = arith.constant dense<0.000000e+00> : vector<1x128xf32>
    %34 = tpu.matmul %31, %1, %cst_22 {dimension_numbers = #tpu.dot_dimension_numbers<[1], [0], [0], [1], [0, 0, 1, 1], [], []>} : vector<1x128xf32>, vector<128x128xf32>, vector<1x128xf32> -> vector<1x128xf32>
    %35 = arith.addf %33, %34 : vector<1x128xf32>
    %c7 = arith.constant 7 : index
    %c0_23 = arith.constant 0 : index
    %36 = vector.load %arg8[%c7, %c0_23] : memref<8x128xf32, #tpu.memory_space<vmem>>, vector<1x128xf32>
    tpu.vector_store %arg8[%c7, %c0_23], %35 {strides = array<i32>} : memref<8x128xf32, #tpu.memory_space<vmem>>, vector<1x128xf32>,
    %c0_24 = arith.constant 0 : index
    %c0_25 = arith.constant 0 : index
    %37 = vector.load %arg8[%c0_24, %c0_25] : memref<8x128xf32, #tpu.memory_space<vmem>>, vector<8x128xf32>
    %c0_26 = arith.constant 0 : index
    %c0_27 = arith.constant 0 : index
    %38 = vector.load %arg4[%c0_26, %c0_27] : memref<16x128xf32, #tpu.memory_space<vmem>>, vector<16x128xf32>
    %cst_28 = arith.constant dense<0.000000e+00> : vector<8x128xf32>
    %39 = tpu.matmul %0, %38, %cst_28 {dimension_numbers = #tpu.dot_dimension_numbers<[1], [0], [0], [1], [0, 0, 1, 1], [], []>} : vector<8x16xf32>, vector<16x128xf32>, vector<8x128xf32> -> vector<8x128xf32>
    %c0_29 = arith.constant 0 : index
    %c0_30 = arith.constant 0 : index
    %40 = vector.load %arg5[%c0_29, %c0_30] : memref<128x128xf32, #tpu.memory_space<vmem>>, vector<128x128xf32>
    %cst_31 = arith.constant dense<0.000000e+00> : vector<8x128xf32>
    %41 = tpu.matmul %37, %40, %cst_31 {dimension_numbers = #tpu.dot_dimension_numbers<[1], [0], [0], [1], [0, 0, 1, 1], [], []>} : vector<8x128xf32>, vector<128x128xf32>, vector<8x128xf32> -> vector<8x128xf32>
    %42 = arith.addf %39, %41 : vector<8x128xf32>
    %c0_32 = arith.constant 0 : index
    %c0_33 = arith.constant 0 : index
    %43 = vector.load %arg6[%c0_32, %c0_33] : memref<1x128xf32, #tpu.memory_space<vmem>>, vector<1x128xf32>
    %44 = vector.broadcast %43 : vector<1x128xf32> to vector<8x128xf32>
    %45 = arith.addf %42, %44 : vector<8x128xf32>
    %46 = math.tanh %45 : vector<8x128xf32>
    %c0_34 = arith.constant 0 : index
    %c0_35 = arith.constant 0 : index
    %47 = vector.load %arg7[%c0_34, %c0_35] : memref<8x128xf32, #tpu.memory_space<vmem>>, vector<8x128xf32>
    tpu.vector_store %arg7[%c0_34, %c0_35], %46 {strides = array<i32>} : memref<8x128xf32, #tpu.memory_space<vmem>>, vector<8x128xf32>,
    return
  }
}

</mosaic_0001>

<bundles_post_ra>
// kernel: custom_rnn_for_context.1
= control target key start
LH: loop header
LB: loop body
LE: loop exit
PB: predicated region body
PF: predicated region fallthrough
CT: control target
= control target key end

     0   :  { %v1516_v3 = vmov 0.0|0.0   ;;  %v1517_v6 = vmov 0.0   ;;  %vm1518_vm0 = vmmov 0   ;;  %s1864_s0 = inlined_call_operand.vmem [shape: f32[8,16], index: 0, kind: input, shape index: {}]   ;;  %s1865_s1 = inlined_call_operand.vmem [shape: f32[16,128], index: 1, kind: input, shape index: {}]   ;;  %s1866_s2 = inlined_call_operand.vmem [shape: f32[128,128], index: 2, kind: input, shape index: {}]   ;;  %s1867_s3 = inlined_call_operand.vmem [shape: f32[1,128], index: 3, kind: input, shape index: {}]   ;;  %s1868_s4 = inlined_call_operand.vmem [shape: f32[16,128], index: 4, kind: input, shape index: {}]   ;;  %s1869_s5 = inlined_call_operand.vmem [shape: f32[128,128], index: 5, kind: input, shape index: {}]   ;;  %s1870_s6 = inlined_call_operand.vmem [shape: f32[1,128], index: 6, kind: input, shape index: {}]   ;;  %s1871_s7 = inlined_call_operand.hbm [shape: f32[8,128], index: 7, kind: output, shape index: {}]  }
   0x1   :  { %v28_v0 = vld [vmem:[%s1866_s2] sm:$0xff]  ;;  %v29_v1 = vld [vmem:[%s1866_s2 + $0x8] sm:$0xff]  ;;  %v30_v2 = vld [vmem:[%s1866_s2 + $0x10] sm:$0xff]  ;;  %1291 = vmatprep.subr.bf16.mxu1 %v1516_v3  ;;  %1288 = vmatprep.subr.bf16.mxu0 %v1516_v3  ;;  %127 = vst [vmem:[#allocation2] sm:$0x1] %v1517_v6 }
   0x2   :  { %v1570_v4 = vpack.c.bf16 %v29_v1, %v28_v0  ;;  %v31_v5 = vld [vmem:[%s1866_s2 + $0x18] sm:$0xff]  ;;  %998 = vmatprep.mubr.msk.f32.mxu0 %vm1518_vm0, %v1517_v6  ;;  %1033 = vmatprep.mubr.msk.f32.mxu1 %vm1518_vm0, %v1517_v6  ;;  %v32_v8 = vld [vmem:[%s1866_s2 + $0x20] sm:$0xff]  ;;  %v33_v9 = vld [vmem:[%s1866_s2 + $0x28] sm:$0xff] }
   0x3   :  { %v1582_v7 = vpack.c.bf16 %v31_v5, %v30_v2  ;;  %v44_v10 = vld [vmem:[%s1865_s1] sm:$0xff]  ;;  %v45_v11 = vld [vmem:[%s1865_s1 + $0x8] sm:$0xff] }
   0x4   :  { %1293 = vmatpush3.bf16.msra.mxu1 %v1570_v4  ;;  %v1289_v12 = vpack.c.bf16 %v45_v11, %v44_v10 }
   0x5   :  { %1294 = vmatprep.subr.bf16.mxu1 %v1516_v3 }
   0x6   :  { %12 = vsyncpa [#allocation4], 0  ;;  %v1598_v13 = vpack.c.bf16 %v33_v9, %v32_v8  ;;  %v34_v14 = vld [vmem:[%s1866_s2 + $0x30] sm:$0xff]  ;;  %v35_v15 = vld [vmem:[%s1866_s2 + $0x38] sm:$0xff]  ;;  %1290 = vmatpush3.bf16.msra.mxu0 %v1289_v12  ;;  %vm53_vm1 = vcmask 130048   ;;  %s1519_s1 = smov [#allocation3]  }
   0x7   :  { %v1610_v16 = vld [vmem:[%s1864_s0] sm:$0xff]  ;;  %1315 = vmatprep.subr.bf16.mxu0 %v1516_v3  ;;  %v1614_v17 = vpack.c.bf16 %v35_v15, %v34_v14  ;;  %v37_v19 = vld [vmem:[%s1866_s2 + $0x48] sm:$0xff]  ;;  %v38_v21 = vld [vmem:[%s1866_s2 + $0x50] sm:$0xff]  ;;  %s840_s23 = sshll.u32 %s1519_s1, 4  ;;  %s841_s23 = int_to_ptr.vmem [resolvable:$true] %s840_s23 }
   0x8   :  { %1296 = vmatpush3.bf16.msra.mxu1 %v1582_v7  ;;  %v36_v18 = vld [vmem:[%s1866_s2 + $0x40] sm:$0xff]  ;;  %v39_v22 = vld [vmem:[%s1866_s2 + $0x58] sm:$0xff]  ;;  %v41_v25 = vld [vmem:[%s1866_s2 + $0x68] sm:$0xff]  ;;  %s1492_s24 = scalar_lea.vmem %s841_s23, 128  ;;  %p1497_p1 = scmp.lt.s32.totalorder %s841_s23, %s841_s23 }
   0x9   :  { %1297 = vmatprep.subr.bf16.mxu1 %v1516_v3  ;;  %999 = vmatmul.mubr.msk.f32.vlgmr.msra.gmra.mrb[0].mxu0 %vm53_vm1, %v1610_v16  ;;  %v1630_v20 = vpack.c.bf16 %v37_v19, %v36_v18  ;;  %v1642_v23 = vpack.c.bf16 %v39_v22, %v38_v21  ;;  %v40_v24 = vld [vmem:[%s1866_s2 + $0x60] sm:$0xff]  ;;  %v42_v27 = vld [vmem:[%s1866_s2 + $0x70] sm:$0xff]  ;;  %v43_v28 = vld [vmem:[%s1866_s2 + $0x78] sm:$0xff]  ;;  %p1493_p0 = scmp.ne.s32.totalorder %s841_s23, %s1492_s24  ;;  %p1498_p2 = scmp.lt.s32.totalorder %s1492_s24, %s1492_s24 }
   0xa   :  { %1317 = vmatpush3.bf16.msra.mxu0 %v1570_v4  ;;  %1068 = vmatprep.mubr.msk.f32.mxu0 %vm1518_vm0, %v1517_v6  ;;  %v1654_v26 = vpack.c.bf16 %v41_v25, %v40_v24  ;;  %v1666_v29 = vpack.c.bf16 %v43_v28, %v42_v27  ;;  %v848_v32 = vld [vmem:[%s1867_s3] ss:$0 sm:$0xff]  ;;  %v669_v58 = vld [vmem:[%s1869_s5 + $0x8] sm:$0xff]  ;;  %v670_v59 = vld [vmem:[%s1869_s5 + $0x10] sm:$0xff] }
   0xb   :  { %1318 = vmatprep.subr.bf16.mxu0 %v1516_v3  ;;  %v668_v57 = vld [vmem:[%s1869_s5] sm:$0xff]  ;;  %v671_v61 = vld [vmem:[%s1869_s5 + $0x18] sm:$0xff]  ;;  %v673_v0 = vld [vmem:[%s1869_s5 + $0x28] sm:$0xff]  ;;  %p1499_p3 = por %p1498_p2, %p1497_p1 }
   0xc   :  { %1299 = vmatpush3.bf16.msra.mxu1 %v1598_v13  ;;  %v1460_v60 = vpack.c.bf16 %v669_v58, %v668_v57  ;;  %v1463_v62 = vpack.c.bf16 %v671_v61, %v670_v59  ;;  %v672_v63 = vld [vmem:[%s1869_s5 + $0x20] sm:$0xff]  ;;  %v674_v2 = vld [vmem:[%s1869_s5 + $0x30] sm:$0xff]  ;;  %v677_v8 = vld [vmem:[%s1869_s5 + $0x48] sm:$0xff] }
   0xd   :  { %1300 = vmatprep.subr.bf16.mxu1 %v1516_v3  ;;  %v1466_v1 = vpack.c.bf16 %v673_v0, %v672_v63  ;;  %v678_v15 = vld [vmem:[%s1869_s5 + $0x50] sm:$0xff]  ;;  %v680_v19 = vld [vmem:[%s1869_s5 + $0x60] sm:$0xff]  ;;  %v667_v22 = vld [vmem:[%s1868_s4 + $0x8] sm:$0xff]  ;;  %p1500_p4 = pnand %p1499_p3, %p1493_p0 }
   0xe   :  { %1320 = vmatpush3.bf16.msra.mxu0 %v1582_v7  ;;  %v666_v21 = vld [vmem:[%s1868_s4] sm:$0xff]  ;;  %v683_v25 = vld [vmem:[%s1869_s5 + $0x78] sm:$0xff] }
   0xf   :  { %1321 = vmatprep.subr.bf16.mxu0 %v1516_v3  ;;  %v1484_v24 = vpack.c.bf16 %v667_v22, %v666_v21 }
  0x10   :  { %1302 = vmatpush3.bf16.msra.mxu1 %v1614_v17 }
  0x11   :  { %1303 = vmatprep.subr.bf16.mxu1 %v1516_v3 }
  0x12   :  { %1323 = vmatpush3.bf16.msra.mxu0 %v1598_v13 }
  0x13   :  { %1324 = vmatprep.subr.bf16.mxu0 %v1516_v3 }
  0x14   :  { %1305 = vmatpush3.bf16.msra.mxu1 %v1630_v20 }
  0x15   :  { %1306 = vmatprep.subr.bf16.mxu1 %v1516_v3 }
  0x16   :  { %1326 = vmatpush3.bf16.msra.mxu0 %v1614_v17 }
  0x17   :  { %1327 = vmatprep.subr.bf16.mxu0 %v1516_v3 }
  0x18   :  { %1308 = vmatpush3.bf16.msra.mxu1 %v1642_v23 }
  0x19   :  { %1309 = vmatprep.subr.bf16.mxu1 %v1516_v3 }
  0x1a   :  { %1329 = vmatpush3.bf16.msra.mxu0 %v1630_v20 }
  0x1b   :  { %1330 = vmatprep.subr.bf16.mxu0 %v1516_v3 }
  0x1c   :  { %1311 = vmatpush3.bf16.msra.mxu1 %v1654_v26 }
  0x1d   :  { %1312 = vmatprep.subr.bf16.mxu1 %v1516_v3 }
  0x1e   :  { %1332 = vmatpush3.bf16.msra.mxu0 %v1642_v23 }
  0x1f   :  { %1333 = vmatprep.subr.bf16.mxu0 %v1516_v3 }
  0x20   :  { %1314 = vmatpush3.bf16.msra.mxu1 %v1666_v29 }
  0x21   :  { %1339 = vmatprep.subr.bf16.mxu1 %v1516_v3 }
  0x22   :  { %1335 = vmatpush3.bf16.msra.mxu0 %v1654_v26 }
  0x23   :  { %1034 = vmatmul.mubr.f32.vlgmr.msra.gmra.mrb[0].mxu1 %v1517_v6  ;;  %1336 = vmatprep.subr.bf16.mxu0 %v1516_v3 }
  0x24   :  { %1341 = vmatpush3.bf16.msra.mxu1 %v1570_v4  ;;  %1103 = vmatprep.mubr.msk.f32.mxu1 %vm1518_vm0, %v1517_v6 }
  0x25   :  { %1342 = vmatprep.subr.bf16.mxu1 %v1516_v3 }
  0x26   :  { %1338 = vmatpush3.bf16.msra.mxu0 %v1666_v29 }
  0x27   :  { %1363 = vmatprep.subr.bf16.mxu0 %v1516_v3 }
  0x28   :  { %1344 = vmatpush3.bf16.msra.mxu1 %v1582_v7 }
  0x29   :  { %1345 = vmatprep.subr.bf16.mxu1 %v1516_v3 }
  0x2c   :  { %1347 = vmatpush3.bf16.msra.mxu1 %v1598_v13 }
  0x2d   :  { %1348 = vmatprep.subr.bf16.mxu1 %v1516_v3 }
  0x30   :  { %1350 = vmatpush3.bf16.msra.mxu1 %v1614_v17 }
  0x31   :  { %1351 = vmatprep.subr.bf16.mxu1 %v1516_v3 }
  0x34   :  { %1353 = vmatpush3.bf16.msra.mxu1 %v1630_v20 }
  0x35   :  { %1354 = vmatprep.subr.bf16.mxu1 %v1516_v3 }
  0x38   :  { %1356 = vmatpush3.bf16.msra.mxu1 %v1642_v23 }
  0x39   :  { %1357 = vmatprep.subr.bf16.mxu1 %v1516_v3 }
  0x3c   :  { %1359 = vmatpush3.bf16.msra.mxu1 %v1654_v26 }
  0x3d   :  { %1360 = vmatprep.subr.bf16.mxu1 %v1516_v3 }
  0x40   :  { %1362 = vmatpush3.bf16.msra.mxu1 %v1666_v29 }
  0x41   :  { %1387 = vmatprep.subr.bf16.mxu1 %v1516_v3 }
  0xdc   :  { %v123_v30 = vpop.f32.mrb[0].mxu0 }
  0xdd   :  { %v1000_v31 = vpop.f32.mrb[1].mxu0  ;;  %v1701_v33 = vadd.f32 %v848_v32, %v123_v30 }
  0xf6   :  { %v194_v34 = vpop.f32.mrb[0].mxu1 }
  0xf7   :  { %v198_v35 = vadd.f32 %v194_v34, %v1701_v33  ;;  %v1035_v36 = vpop.f32.mrb[1].mxu1 }
  0xf9   :  { %199 = vst [vmem:[#allocation2 + $0x1] sm:$0x1] %v198_v35  ;;  %1069 = vmatmul.mubr.f32.vlgmr.msra.gmra.mrb[2].mxu0 %v198_v35 }
  0xfa   :  { %1365 = vmatpush3.bf16.msra.mxu0 %v1570_v4  ;;  %1138 = vmatprep.mubr.msk.f32.mxu0 %vm1518_vm0, %v1517_v6 }
  0xfb   :  { %1366 = vmatprep.subr.bf16.mxu0 %v1516_v3 }
  0xfe   :  { %1368 = vmatpush3.bf16.msra.mxu0 %v1582_v7 }
  0xff   :  { %1369 = vmatprep.subr.bf16.mxu0 %v1516_v3 }
 0x102   :  { %1371 = vmatpush3.bf16.msra.mxu0 %v1598_v13 }
 0x103   :  { %1372 = vmatprep.subr.bf16.mxu0 %v1516_v3 }
 0x106   :  { %1374 = vmatpush3.bf16.msra.mxu0 %v1614_v17 }
 0x107   :  { %1375 = vmatprep.subr.bf16.mxu0 %v1516_v3 }
 0x10a   :  { %1377 = vmatpush3.bf16.msra.mxu0 %v1630_v20 }
 0x10b   :  { %1378 = vmatprep.subr.bf16.mxu0 %v1516_v3 }
 0x10e   :  { %1380 = vmatpush3.bf16.msra.mxu0 %v1642_v23 }
 0x10f   :  { %1381 = vmatprep.subr.bf16.mxu0 %v1516_v3 }
 0x112   :  { %1383 = vmatpush3.bf16.msra.mxu0 %v1654_v26 }
 0x113   :  { %1384 = vmatprep.subr.bf16.mxu0 %v1516_v3 }
 0x116   :  { %1386 = vmatpush3.bf16.msra.mxu0 %v1666_v29 }
 0x117   :  { %1411 = vmatprep.subr.bf16.mxu0 %v1516_v3 }
 0x1cc   :  { %v266_v37 = vpop.f32.mrb[2].mxu0 }
 0x1cd   :  { %v271_v38 = vrot.slane %v266_v37, 7  ;;  %v1070_v39 = vpop.f32.mrb[3].mxu0 }
 0x1cf   :  { %v273_v40 = vadd.f32 %v271_v38, %v1701_v33 }
 0x1d1   :  { %274 = vst [vmem:[#allocation2 + $0x1] sm:$0x2] %v273_v40  ;;  %v276_v41 = vrot.slane %v273_v40, 1 }
 0x1d3   :  { %1104 = vmatmul.mubr.f32.vlgmr.msra.gmra.mrb[2].mxu1 %v276_v41 }
 0x1d4   :  { %1389 = vmatpush3.bf16.msra.mxu1 %v1570_v4  ;;  %1173 = vmatprep.mubr.msk.f32.mxu1 %vm1518_vm0, %v1517_v6 }
 0x1d5   :  { %1390 = vmatprep.subr.bf16.mxu1 %v1516_v3 }
 0x1d8   :  { %1392 = vmatpush3.bf16.msra.mxu1 %v1582_v7 }
 0x1d9   :  { %1393 = vmatprep.subr.bf16.mxu1 %v1516_v3 }
 0x1dc   :  { %1395 = vmatpush3.bf16.msra.mxu1 %v1598_v13 }
 0x1dd   :  { %1396 = vmatprep.subr.bf16.mxu1 %v1516_v3 }
 0x1e0   :  { %1398 = vmatpush3.bf16.msra.mxu1 %v1614_v17 }
 0x1e1   :  { %1399 = vmatprep.subr.bf16.mxu1 %v1516_v3 }
 0x1e4   :  { %1401 = vmatpush3.bf16.msra.mxu1 %v1630_v20 }
 0x1e5   :  { %1402 = vmatprep.subr.bf16.mxu1 %v1516_v3 }
 0x1e8   :  { %1404 = vmatpush3.bf16.msra.mxu1 %v1642_v23 }
 0x1e9   :  { %1405 = vmatprep.subr.bf16.mxu1 %v1516_v3 }
 0x1ec   :  { %1407 = vmatpush3.bf16.msra.mxu1 %v1654_v26 }
 0x1ed   :  { %1408 = vmatprep.subr.bf16.mxu1 %v1516_v3 }
 0x1f0   :  { %1410 = vmatpush3.bf16.msra.mxu1 %v1666_v29 }
 0x1f1   :  { %1435 = vmatprep.subr.bf16.mxu1 %v1516_v3 }
 0x2a6   :  { %v344_v42 = vpop.f32.mrb[2].mxu1 }
 0x2a7   :  { %v349_v43 = vrot.slane %v344_v42, 6  ;;  %v1105_v44 = vpop.f32.mrb[3].mxu1 }
 0x2a9   :  { %v351_v45 = vadd.f32 %v349_v43, %v1701_v33 }
 0x2ab   :  { %352 = vst [vmem:[#allocation2 + $0x1] sm:$0x4] %v351_v45  ;;  %v354_v46 = vrot.slane %v351_v45, 2 }
 0x2ad   :  { %1139 = vmatmul.mubr.f32.vlgmr.msra.gmra.mrb[4].mxu0 %v354_v46 }
 0x2ae   :  { %1413 = vmatpush3.bf16.msra.mxu0 %v1570_v4  ;;  %1208 = vmatprep.mubr.msk.f32.mxu0 %vm1518_vm0, %v1517_v6 }
 0x2af   :  { %1414 = vmatprep.subr.bf16.mxu0 %v1516_v3 }
 0x2b2   :  { %1416 = vmatpush3.bf16.msra.mxu0 %v1582_v7 }
 0x2b3   :  { %1417 = vmatprep.subr.bf16.mxu0 %v1516_v3 }
 0x2b6   :  { %1419 = vmatpush3.bf16.msra.mxu0 %v1598_v13 }
 0x2b7   :  { %1420 = vmatprep.subr.bf16.mxu0 %v1516_v3 }
 0x2ba   :  { %1422 = vmatpush3.bf16.msra.mxu0 %v1614_v17 }
 0x2bb   :  { %1423 = vmatprep.subr.bf16.mxu0 %v1516_v3 }
 0x2be   :  { %1425 = vmatpush3.bf16.msra.mxu0 %v1630_v20 }
 0x2bf   :  { %1426 = vmatprep.subr.bf16.mxu0 %v1516_v3 }
 0x2c2   :  { %1428 = vmatpush3.bf16.msra.mxu0 %v1642_v23 }
 0x2c3   :  { %1429 = vmatprep.subr.bf16.mxu0 %v1516_v3 }
 0x2c6   :  { %1431 = vmatpush3.bf16.msra.mxu0 %v1654_v26 }
 0x2c7   :  { %1432 = vmatprep.subr.bf16.mxu0 %v1516_v3 }
 0x2ca   :  { %1434 = vmatpush3.bf16.msra.mxu0 %v1666_v29 }
 0x2cb   :  { %1459 = vmatprep.subr.bf16.mxu0 %v1516_v3 }
 0x380   :  { %v422_v47 = vpop.f32.mrb[4].mxu0 }
 0x381   :  { %v427_v48 = vrot.slane %v422_v47, 5  ;;  %v1140_v49 = vpop.f32.mrb[5].mxu0 }
 0x383   :  { %v429_v50 = vadd.f32 %v427_v48, %v1701_v33 }
 0x385   :  { %430 = vst [vmem:[#allocation2 + $0x1] sm:$0x8] %v429_v50  ;;  %v432_v51 = vrot.slane %v429_v50, 3 }
 0x387   :  { %1174 = vmatmul.mubr.f32.vlgmr.msra.gmra.mrb[4].mxu1 %v432_v51 }
 0x388   :  { %1437 = vmatpush3.bf16.msra.mxu1 %v1570_v4  ;;  %1243 = vmatprep.mubr.msk.f32.mxu1 %vm1518_vm0, %v1517_v6  ;;  %v675_v4 = vld [vmem:[%s1869_s5 + $0x38] sm:$0xff] }
 0x389   :  { %1438 = vmatprep.subr.bf16.mxu1 %v1516_v3  ;;  %v1469_v5 = vpack.c.bf16 %v675_v4, %v674_v2 }
 0x38c   :  { %1440 = vmatpush3.bf16.msra.mxu1 %v1582_v7  ;;  %v676_v7 = vld [vmem:[%s1869_s5 + $0x40] sm:$0xff] }
 0x38d   :  { %1441 = vmatprep.subr.bf16.mxu1 %v1516_v3  ;;  %v1472_v9 = vpack.c.bf16 %v677_v8, %v676_v7 }
 0x390   :  { %1443 = vmatpush3.bf16.msra.mxu1 %v1598_v13 }
 0x391   :  { %1444 = vmatprep.subr.bf16.mxu1 %v1516_v3 }
 0x394   :  { %1446 = vmatpush3.bf16.msra.mxu1 %v1614_v17  ;;  %v679_v17 = vld [vmem:[%s1869_s5 + $0x58] sm:$0xff] }
 0x395   :  { %1447 = vmatprep.subr.bf16.mxu1 %v1516_v3  ;;  %v1475_v18 = vpack.c.bf16 %v679_v17, %v678_v15 }
 0x398   :  { %1449 = vmatpush3.bf16.msra.mxu1 %v1630_v20 }
 0x399   :  { %1450 = vmatprep.subr.bf16.mxu1 %v1516_v3 }
 0x39c   :  { %1452 = vmatpush3.bf16.msra.mxu1 %v1642_v23  ;;  %v682_v23 = vld [vmem:[%s1869_s5 + $0x70] sm:$0xff] }
 0x39d   :  { %1453 = vmatprep.subr.bf16.mxu1 %v1516_v3 }
 0x3a0   :  { %1455 = vmatpush3.bf16.msra.mxu1 %v1654_v26  ;;  %v1481_v26 = vpack.c.bf16 %v683_v25, %v682_v23 }
 0x3a1   :  { %1456 = vmatprep.subr.bf16.mxu1 %v1516_v3 }
 0x3a4   :  { %1458 = vmatpush3.bf16.msra.mxu1 %v1666_v29 }
 0x3a5   :  { %1483 = vmatprep.subr.bf16.mxu1 %v1516_v3 }
 0x45a   :  { %v500_v52 = vpop.f32.mrb[4].mxu1 }
 0x45b   :  { %v505_v53 = vrot.slane %v500_v52, 4  ;;  %v1175_v54 = vpop.f32.mrb[5].mxu1 }
 0x45d   :  { %v507_v55 = vadd.f32 %v505_v53, %v1701_v33 }
 0x45f   :  { %508 = vst [vmem:[#allocation2 + $0x1] sm:$0x10] %v507_v55  ;;  %v510_v56 = vrot.slane %v507_v55, 4 }
 0x461   :  { %1209 = vmatmul.mubr.f32.vlgmr.msra.gmra.mrb[6].mxu0 %v510_v56 }
 0x462   :  { %1278 = vmatprep.mubr.msk.f32.mxu0 %vm1518_vm0, %v1517_v6  ;;  %1461 = vmatpush3.bf16.msra.mxu0 %v1460_v60 }
 0x463   :  { %1462 = vmatprep.subr.bf16.mxu0 %v1516_v3 }
 0x466   :  { %1464 = vmatpush3.bf16.msra.mxu0 %v1463_v62 }
 0x467   :  { %1465 = vmatprep.subr.bf16.mxu0 %v1516_v3 }
 0x46a   :  { %1467 = vmatpush3.bf16.msra.mxu0 %v1466_v1 }
 0x46b   :  { %1468 = vmatprep.subr.bf16.mxu0 %v1516_v3 }
 0x46e   :  { %1470 = vmatpush3.bf16.msra.mxu0 %v1469_v5 }
 0x46f   :  { %1471 = vmatprep.subr.bf16.mxu0 %v1516_v3 }
 0x472   :  { %1473 = vmatpush3.bf16.msra.mxu0 %v1472_v9 }
 0x473   :  { %1474 = vmatprep.subr.bf16.mxu0 %v1516_v3 }
 0x476   :  { %1476 = vmatpush3.bf16.msra.mxu0 %v1475_v18 }
 0x477   :  { %1477 = vmatprep.subr.bf16.mxu0 %v1516_v3 }
 0x534   :  { %v578_v10 = vpop.f32.mrb[6].mxu0 }
 0x535   :  { %v583_v11 = vrot.slane %v578_v10, 3  ;;  %v1210_v12 = vpop.f32.mrb[7].mxu0 }
 0x537   :  { %v585_v13 = vadd.f32 %v583_v11, %v1701_v33 }
 0x539   :  { %586 = vst [vmem:[#allocation2 + $0x1] sm:$0x20] %v585_v13  ;;  %v588_v14 = vrot.slane %v585_v13, 5 }
 0x53b   :  { %1244 = vmatmul.mubr.f32.vlgmr.msra.gmra.mrb[6].mxu1 %v588_v14 }
 0x53c   :  { %1285 = vmatprep.mubr.msk.f32.mxu1 %vm1518_vm0, %v1517_v6  ;;  %v681_v6 = vld [vmem:[%s1869_s5 + $0x68] sm:$0xff]  ;;  %1485 = vmatpush3.bf16.msra.mxu1 %v1484_v24 }
 0x53d   :  { %v1478_v20 = vpack.c.bf16 %v681_v6, %v680_v19 }
 0x53f   :  { %1479 = vmatpush3.bf16.msra.mxu0 %v1478_v20  ;;  %1286 = vmatmul.mubr.msk.f32.vlgmr.msra.gmra.mrb[8].mxu1 %vm53_vm1, %v1610_v16 }
 0x540   :  { %1480 = vmatprep.subr.bf16.mxu0 %v1516_v3  ;;  %v851_v3 = vld [vmem:[%s1870_s6] ss:$0 sm:$0xff] }
 0x543   :  { %1482 = vmatpush3.bf16.msra.mxu0 %v1481_v26 }
 0x60e   :  { %v656_v27 = vpop.f32.mrb[6].mxu1 }
 0x60f   :  { %v661_v28 = vrot.slane %v656_v27, 2  ;;  %v1245_v29 = vpop.f32.mrb[7].mxu1 }
 0x611   :  { %v663_v30 = vadd.f32 %v661_v28, %v1701_v33 }
 0x612   :  { %v820_v32 = vpop.f32.mrb[8].mxu1 }
 0x613   :  { %664 = vst [vmem:[#allocation2 + $0x1] sm:$0x40] %v663_v30  ;;  %v1287_v34 = vpop.f32.mrb[9].mxu1 }
 0x61a   :  { %v665_v31 = vld [vmem:[#allocation2] sm:$0xff] }
 0x61b   :  { %1279 = vmatmul.mubr.f32.vlgmr.msra.gmra.mrb[8].mxu0 %v665_v31 }
 0x6ee   :  { %v750_v35 = vpop.f32.mrb[8].mxu0 }
 0x6ef   :  { %v821_v36 = vadd.f32 %v820_v32, %v750_v35  ;;  %v1280_v37 = vpop.f32.mrb[9].mxu0 }
 0x6f1   :  { %v831_v38 = vadd.f32 %v851_v3, %v821_v36 }
 0x6f3   :  { %1490 = vtanh.f32 %v831_v38 }
 0x6fd   :  { %v1491_v16 = vpop.eup %1490 }
 0x6fe   :  { %833 = vst [vmem:[#allocation3] sm:$0xff] %v1491_v16 }
 0x6ff   :  { %1503 = shalt.err (!%p1500_p4)
}
 0x700   :  { %s1504_s6 = scalar_lea.hbm %s1871_s7, 128 }
 0x701   :  { %p1505_p5 = scmp.ne.s32.totalorder %s1871_s7, %s1504_s6  ;;  %p1508_p6 = scmp.lt.u32.totalorder %s1504_s6, %s1871_s7 }
 0x703   :  { %p1510_p7 = pnand %p1508_p6, %p1505_p5 }
 0x705   :  { %1513 = shalt.err (!%p1510_p7)
}
 0x706   :  { %843 = dma.vmem_to_hbm [thread:$0]  %s841_s23, 128, %s1871_s7, [#allocation4]  }
 0x707   :  { %1514 = dma.done.wait [#allocation4], 128  }
 0x708   :  { %1515 = vsyncadd [#allocation4], 4294967168 }
 0x709   :  { %847 = vsyncpa [#allocation4], 1 }

</bundles_post_ra>
